<compile_context>
chip_gen: v7x
topology: tpu7x:2x2x1
jax: 0.10.0
libtpu: 0.0.40
codegen_flags: <defaults>
</compile_context>

<pallas_src>
import functools

import jax
import jax.numpy as jnp
from jax.experimental import pallas as pl
from jax.experimental.pallas import tpu as pltpu


def _cornn_kernel(w_ref, om_ref, al_ref, hy_ref, hz_ref,
                  hy_out_ref, hz_out_ref, *, C, S, dt, steps):
    """Runs `steps` coRNN updates for one batch image (all C channels at once).

    w_ref  : (9*C, C)  conv weight; row = tap*C + co, col = ci, tap = ky*3 + kx.
    om/al  : (C, S*S)  per-pixel omega / alpha.
    hy/hz  : (C, S*S)  state at t=0; outputs are the state after `steps` steps.
    """
    SS = S * S
    om = om_ref[...]
    al = al_ref[...]
    w = w_ref[...]                        # f32 or bf16 (chosen by the wrapper)

    # f32 path uses HIGHEST so the MXU does the full-precision multi-pass matmul;
    # bf16 path is a single pass with f32 accumulation.
    precision = (jax.lax.Precision.HIGHEST if w.dtype == jnp.float32
                 else jax.lax.Precision.DEFAULT)

    # Loop-invariant x-wrap masks, hoisted out of the time loop.
    col = jax.lax.broadcasted_iota(jnp.int32, (C, SS), 1)
    if (S & (S - 1)) == 0:
        col = col & (S - 1)               # cheap power-of-two modulo
    else:
        col = col % S
    first_col = col == 0
    last_col = col == S - 1

    def roll_flat(x, delta):
        # result[r, n] = x[r, (n + delta) % SS]   (np.roll with shift = -delta)
        return pltpu.roll(x, (-delta) % SS, 1)

    def shift_tap(x, dy, dx):
        # result[r, y*S + x] = x[r, ((y+dy) % S)*S + (x+dx) % S]
        if dy != 0:
            # y shift: exact as a flat roll because the offset is a multiple of S.
            x = roll_flat(x, dy * S)
        if dx != 0:
            inner = roll_flat(x, dx)                             # non-wrap columns
            outer = roll_flat(x, dx - S if dx > 0 else dx + S)   # the wrap column
            x = jnp.where(last_col if dx > 0 else first_col, outer, inner)
        return x

    def step(_, carry):
        hy, hz = carry
        # Channel-mix all 9 taps in one small MXU matmul (K = C); spatial shifting
        # commutes with the pointwise-in-space channel mixing, so shift afterwards.
        mixed = jnp.dot(w, hy.astype(w.dtype),
                        preferred_element_type=jnp.float32,
                        precision=precision)                     # (9*C, SS) f32
        spring_pre = jnp.zeros((C, SS), jnp.float32)
        for tap in range(9):
            dy, dx = tap // 3 - 1, tap % 3 - 1
            spring_pre = spring_pre + shift_tap(
                mixed[tap * C:(tap + 1) * C, :], dy, dx)
        spring = jnp.tanh(spring_pre)                            # EUP
        new_hz = hz + dt * (spring - om * hy - al * hz)          # f32 VPU
        new_hy = hy + dt * new_hz
        return new_hy, new_hz

    hy_f, hz_f = jax.lax.fori_loop(0, steps, step, (hy_ref[...], hz_ref[...]))
    hy_out_ref[...] = hy_f
    hz_out_ref[...] = hz_f


def _pack_weight(weight, channels, dtype=jnp.float32):
    """Conv weight (C, C, 3, 3) -> (9*C, C): row tap*C + co, col ci, tap = ky*3 + kx."""
    C = channels
    w = jnp.asarray(weight, jnp.float32)
    return jnp.transpose(w, (2, 3, 0, 1)).reshape(9 * C, C).astype(dtype)


def cornn_rollout(x_t, hy, hz, omega, alpha, weight, *, channels, spatial, dt,
                  steps=1, matmul_dtype=jnp.float32):
    """Fused rollout: applies `steps` coRNNCell.forward updates in a single
    pallas_call and returns the final (new_hy, new_hz)."""
    del x_t  # the reference forward does not use the input frame
    B = hy.shape[0]
    C, S = channels, spatial
    SS = S * S

    hy3 = hy.reshape(B, C, SS).astype(jnp.float32)
    hz3 = hz.reshape(B, C, SS).astype(jnp.float32)
    om3 = omega.reshape(B, C, SS).astype(jnp.float32)
    al3 = alpha.reshape(B, C, SS).astype(jnp.float32)
    w_pack = _pack_weight(weight, C, dtype=matmul_dtype)

    kernel = functools.partial(_cornn_kernel, C=C, S=S, dt=float(dt), steps=int(steps))

    state_spec = pl.BlockSpec((None, C, SS), lambda b: (b, 0, 0))
    # TODO(synk): when a caller drives step-by-step and donates hy/hz, add
    # input_output_aliases={3: 0, 4: 1} so the state buffers are reused in place.
    new_hy, new_hz = pl.pallas_call(
        kernel,
        grid=(B,),
        in_specs=[pl.BlockSpec((9 * C, C), lambda b: (0, 0)),   # weight (shared, O(C^2))
                  state_spec,    # omega
                  state_spec,    # alpha
                  state_spec,    # hy
                  state_spec],   # hz
        out_specs=(state_spec, state_spec),
        out_shape=(jax.ShapeDtypeStruct((B, C, SS), jnp.float32),
                   jax.ShapeDtypeStruct((B, C, SS), jnp.float32)),
        compiler_params=pltpu.CompilerParams(
            dimension_semantics=("parallel",)),   # batch images are independent
    )(w_pack, om3, al3, hy3, hz3)

    return new_hy.reshape(hy.shape), new_hz.reshape(hz.shape)


def cornn_cell_forward(x_t, hy, hz, omega, alpha, weight, *, channels, spatial, dt,
                       matmul_dtype=jnp.float32):
    """Pallas equivalent of a single coRNNCell.forward step."""
    return cornn_rollout(x_t, hy, hz, omega, alpha, weight, channels=channels,
                         spatial=spatial, dt=dt, steps=1, matmul_dtype=matmul_dtype)


# ----------------------------- pure-JAX reference -----------------------------

def _reference_step(hy, hz, omega, alpha, weight, *, channels, spatial, dt):
    B = hy.shape[0]
    C, S = channels, spatial
    hy2d = hy.reshape(B, C, S, S)
    padded = jnp.pad(hy2d, ((0, 0), (0, 0), (1, 1), (1, 1)), mode='wrap')
    conv = jax.lax.conv_general_dilated(
        padded, weight, window_strides=(1, 1), padding='VALID',
        dimension_numbers=('NCHW', 'OIHW', 'NCHW'))
    spring = jnp.tanh(conv).reshape(B, C, S * S)
    new_hz = hz + dt * (spring - omega * hy - alpha * hz)
    new_hy = hy + dt * new_hz
    return new_hy, new_hz


def _reference_rollout(hy, hz, omega, alpha, weight, *, channels, spatial, dt, steps):
    for _ in range(steps):
        hy, hz = _reference_step(hy, hz, omega, alpha, weight,
                                 channels=channels, spatial=spatial, dt=dt)
    return hy, hz


def make_laplacian_weight(channels):
    """Deterministic Conv2d weight as in coRNNCell.__init__ (block-diag Laplacian)."""
    lap = jnp.array([[0.0, 1.0, 0.0],
                     [1.0, -4.0, 1.0],
                     [0.0, 1.0, 0.0]], dtype=jnp.float32)
    eye = jnp.eye(channels, dtype=jnp.float32)
    return jnp.einsum('oc,yx->ocyx', eye, lap)


if __name__ == "__main__":
    B, C, S = 2, 4, 16
    dt = 0.05
    T = 8

    key = jax.random.PRNGKey(0)
    k1, k2, k3, k4, k5, k6 = jax.random.split(key, 6)
    x_t = jax.random.normal(k1, (B, 1, S, S), dtype=jnp.float32)      # unused forcing
    hy = jax.random.normal(k2, (B, C, S * S), dtype=jnp.float32)
    hz = jax.random.normal(k3, (B, C, S * S), dtype=jnp.float32)
    omega = jax.random.uniform(k4, (B, C, S * S), dtype=jnp.float32)
    alpha = jax.random.uniform(k5, (B, C, S * S), dtype=jnp.float32)

    # 1) Single step, module-init (block-diagonal Laplacian) weight, f32 matmul.
    w_lap = make_laplacian_weight(C)
    new_hy, new_hz = cornn_cell_forward(
        x_t, hy, hz, omega, alpha, w_lap, channels=C, spatial=S, dt=dt)
    jax.block_until_ready((new_hy, new_hz))
    ref_hy, ref_hz = _reference_step(hy, hz, omega, alpha, w_lap,
                                     channels=C, spatial=S, dt=dt)
    assert jnp.allclose(new_hy, ref_hy, rtol=1e-4, atol=1e-4), "single-step new_hy mismatch"
    assert jnp.allclose(new_hz, ref_hz, rtol=1e-4, atol=1e-4), "single-step new_hz mismatch"

    # 2) Fused T-step rollout with a general (channel-mixing) weight, f32 matmul.
    w_gen = w_lap + 0.05 * jax.random.normal(k6, (C, C, 3, 3), dtype=jnp.float32)
    roll_hy, roll_hz = cornn_rollout(
        x_t, hy, hz, omega, alpha, w_gen, channels=C, spatial=S, dt=dt, steps=T)
    jax.block_until_ready((roll_hy, roll_hz))
    ref_roll_hy, ref_roll_hz = _reference_rollout(
        hy, hz, omega, alpha, w_gen, channels=C, spatial=S, dt=dt, steps=T)
    assert jnp.allclose(roll_hy, ref_roll_hy, rtol=1e-4, atol=1e-4), "rollout hy mismatch"
    assert jnp.allclose(roll_hz, ref_roll_hz, rtol=1e-4, atol=1e-4), "rollout hz mismatch"

    # 3) bf16 matmul operands (f32 accumulation / ODE math): looser tolerance.
    bf_hy, bf_hz = cornn_cell_forward(
        x_t, hy, hz, omega, alpha, w_lap, channels=C, spatial=S, dt=dt,
        matmul_dtype=jnp.bfloat16)
    jax.block_until_ready((bf_hy, bf_hz))
    assert jnp.allclose(bf_hy, ref_hy, rtol=2e-2, atol=2e-2), "bf16 new_hy mismatch"
    assert jnp.allclose(bf_hz, ref_hz, rtol=2e-2, atol=2e-2), "bf16 new_hz mismatch"

    print("KERNEL_OK")
</pallas_src>

<mosaic_0001>
module attributes {stable_mosaic.version = 11 : i64} {
  func.func @_cornn_kernel(%arg0: i32, %arg1: memref<36x4xf32, #tpu.memory_space<vmem>>, %arg2: memref<1x4x256xf32, #tpu.memory_space<vmem>>, %arg3: memref<1x4x256xf32, #tpu.memory_space<vmem>>, %arg4: memref<1x4x256xf32, #tpu.memory_space<vmem>>, %arg5: memref<1x4x256xf32, #tpu.memory_space<vmem>>, %arg6: memref<1x4x256xf32, #tpu.memory_space<vmem>>, %arg7: memref<1x4x256xf32, #tpu.memory_space<vmem>>) attributes {dimension_semantics = [#tpu.dimension_semantics<parallel>], iteration_bounds = array<i64: 2>, scalar_prefetch = 0 : i64, scratch_operands = 0 : i64, tpu.core_type = #tpu.core_type<tc>, window_params = [{pipeline_mode = #tpu.pipeline_mode<synchronous>, transform_indices = @transform_0, window_bounds = array<i64: 36, 4>}, {transform_indices = @transform_1, window_bounds = array<i64: 1, 4, 256>}, {transform_indices = @transform_2, window_bounds = array<i64: 1, 4, 256>}, {transform_indices = @transform_3, window_bounds = array<i64: 1, 4, 256>}, {transform_indices = @transform_4, window_bounds = array<i64: 1, 4, 256>}, {transform_indices = @transform_5, window_bounds = array<i64: 1, 4, 256>}, {transform_indices = @transform_6, window_bounds = array<i64: 1, 4, 256>}]} {
    %c0 = arith.constant 0 : index
    %c0_0 = arith.constant 0 : index
    %c0_1 = arith.constant 0 : index
    %0 = vector.load %arg2[%c0, %c0_0, %c0_1] : memref<1x4x256xf32, #tpu.memory_space<vmem>>, vector<1x4x256xf32>
    %1 = vector.shape_cast %0 : vector<1x4x256xf32> to vector<4x256xf32>
    %c0_2 = arith.constant 0 : index
    %c0_3 = arith.constant 0 : index
    %c0_4 = arith.constant 0 : index
    %2 = vector.load %arg3[%c0_2, %c0_3, %c0_4] : memref<1x4x256xf32, #tpu.memory_space<vmem>>, vector<1x4x256xf32>
    %3 = vector.shape_cast %2 : vector<1x4x256xf32> to vector<4x256xf32>
    %c0_5 = arith.constant 0 : index
    %c0_6 = arith.constant 0 : index
    %4 = vector.load %arg1[%c0_5, %c0_6] : memref<36x4xf32, #tpu.memory_space<vmem>>, vector<36x4xf32>
    %5 = tpu.iota {dimensions = array<i32: 1>} : vector<4x256xi32>
    %c15_i32 = arith.constant 15 : i32
    %6 = vector.broadcast %c15_i32 : i32 to vector<4x256xi32>
    %7 = arith.andi %5, %6 : vector<4x256xi32>
    %c0_i32 = arith.constant 0 : i32
    %8 = vector.broadcast %c0_i32 : i32 to vector<4x256xi32>
    %9 = arith.cmpi eq, %7, %8 : vector<4x256xi32>
    %c15_i32_7 = arith.constant 15 : i32
    %10 = vector.broadcast %c15_i32_7 : i32 to vector<4x256xi32>
    %11 = arith.cmpi eq, %7, %10 : vector<4x256xi32>
    %c0_8 = arith.constant 0 : index
    %c0_9 = arith.constant 0 : index
    %c0_10 = arith.constant 0 : index
    %12 = vector.load %arg4[%c0_8, %c0_9, %c0_10] : memref<1x4x256xf32, #tpu.memory_space<vmem>>, vector<1x4x256xf32>
    %13 = vector.shape_cast %12 : vector<1x4x256xf32> to vector<4x256xf32>
    %c0_11 = arith.constant 0 : index
    %c0_12 = arith.constant 0 : index
    %c0_13 = arith.constant 0 : index
    %14 = vector.load %arg5[%c0_11, %c0_12, %c0_13] : memref<1x4x256xf32, #tpu.memory_space<vmem>>, vector<1x4x256xf32>
    %15 = vector.shape_cast %14 : vector<1x4x256xf32> to vector<4x256xf32>
    %c0_i32_14 = arith.constant 0 : i32
    %cst = arith.constant dense<0.000000e+00> : vector<36x256xf32>
    %16 = tpu.matmul %4, %13, %cst {dimension_numbers = #tpu.dot_dimension_numbers<[1], [0], [0], [1], [0, 0, 1, 1], [], []>, precision = #tpu.contract_precision<fp32>} : vector<36x4xf32>, vector<4x256xf32>, vector<36x256xf32> -> vector<36x256xf32>
    %cst_15 = arith.constant 0.000000e+00 : f32
    %17 = vector.broadcast %cst_15 : f32 to vector<4x256xf32>
    %18 = vector.extract_strided_slice %16 {offsets = [0, 0], sizes = [4, 256], strides = [1, 1]} : vector<36x256xf32> to vector<4x256xf32>
    %c16_i32 = arith.constant 16 : i32
    %19 = tpu.dynamic_rotate %18 by %c16_i32 dim 1 : vector<4x256xf32>, i32 -> vector<4x256xf32>
    %c1_i32 = arith.constant 1 : i32
    %20 = tpu.dynamic_rotate %19 by %c1_i32 dim 1 : vector<4x256xf32>, i32 -> vector<4x256xf32>
    %c241_i32 = arith.constant 241 : i32
    %21 = tpu.dynamic_rotate %19 by %c241_i32 dim 1 : vector<4x256xf32>, i32 -> vector<4x256xf32>
    %22 = arith.select %9, %21, %20 : vector<4x256xi1>, vector<4x256xf32>
    %23 = arith.addf %17, %22 : vector<4x256xf32>
    %24 = vector.extract_strided_slice %16 {offsets = [4, 0], sizes = [4, 256], strides = [1, 1]} : vector<36x256xf32> to vector<4x256xf32>
    %c16_i32_16 = arith.constant 16 : i32
    %25 = tpu.dynamic_rotate %24 by %c16_i32_16 dim 1 : vector<4x256xf32>, i32 -> vector<4x256xf32>
    %26 = arith.addf %23, %25 : vector<4x256xf32>
    %27 = vector.extract_strided_slice %16 {offsets = [8, 0], sizes = [4, 256], strides = [1, 1]} : vector<36x256xf32> to vector<4x256xf32>
    %c16_i32_17 = arith.constant 16 : i32
    %28 = tpu.dynamic_rotate %27 by %c16_i32_17 dim 1 : vector<4x256xf32>, i32 -> vector<4x256xf32>
    %c255_i32 = arith.constant 255 : i32
    %29 = tpu.dynamic_rotate %28 by %c255_i32 dim 1 : vector<4x256xf32>, i32 -> vector<4x256xf32>
    %c15_i32_18 = arith.constant 15 : i32
    %30 = tpu.dynamic_rotate %28 by %c15_i32_18 dim 1 : vector<4x256xf32>, i32 -> vector<4x256xf32>
    %31 = arith.select %11, %30, %29 : vector<4x256xi1>, vector<4x256xf32>
    %32 = arith.addf %26, %31 : vector<4x256xf32>
    %33 = vector.extract_strided_slice %16 {offsets = [12, 0], sizes = [4, 256], strides = [1, 1]} : vector<36x256xf32> to vector<4x256xf32>
    %c1_i32_19 = arith.constant 1 : i32
    %34 = tpu.dynamic_rotate %33 by %c1_i32_19 dim 1 : vector<4x256xf32>, i32 -> vector<4x256xf32>
    %c241_i32_20 = arith.constant 241 : i32
    %35 = tpu.dynamic_rotate %33 by %c241_i32_20 dim 1 : vector<4x256xf32>, i32 -> vector<4x256xf32>
    %36 = arith.select %9, %35, %34 : vector<4x256xi1>, vector<4x256xf32>
    %37 = arith.addf %32, %36 : vector<4x256xf32>
    %38 = vector.extract_strided_slice %16 {offsets = [16, 0], sizes = [4, 256], strides = [1, 1]} : vector<36x256xf32> to vector<4x256xf32>
    %39 = arith.addf %37, %38 : vector<4x256xf32>
    %40 = vector.extract_strided_slice %16 {offsets = [20, 0], sizes = [4, 256], strides = [1, 1]} : vector<36x256xf32> to vector<4x256xf32>
    %c255_i32_21 = arith.constant 255 : i32
    %41 = tpu.dynamic_rotate %40 by %c255_i32_21 dim 1 : vector<4x256xf32>, i32 -> vector<4x256xf32>
    %c15_i32_22 = arith.constant 15 : i32
    %42 = tpu.dynamic_rotate %40 by %c15_i32_22 dim 1 : vector<4x256xf32>, i32 -> vector<4x256xf32>
    %43 = arith.select %11, %42, %41 : vector<4x256xi1>, vector<4x256xf32>
    %44 = arith.addf %39, %43 : vector<4x256xf32>
    %45 = vector.extract_strided_slice %16 {offsets = [24, 0], sizes = [4, 256], strides = [1, 1]} : vector<36x256xf32> to vector<4x256xf32>
    %c240_i32 = arith.constant 240 : i32
    %46 = tpu.dynamic_rotate %45 by %c240_i32 dim 1 : vector<4x256xf32>, i32 -> vector<4x256xf32>
    %c1_i32_23 = arith.constant 1 : i32
    %47 = tpu.dynamic_rotate %46 by %c1_i32_23 dim 1 : vector<4x256xf32>, i32 -> vector<4x256xf32>
    %c241_i32_24 = arith.constant 241 : i32
    %48 = tpu.dynamic_rotate %46 by %c241_i32_24 dim 1 : vector<4x256xf32>, i32 -> vector<4x256xf32>
    %49 = arith.select %9, %48, %47 : vector<4x256xi1>, vector<4x256xf32>
    %50 = arith.addf %44, %49 : vector<4x256xf32>
    %51 = vector.extract_strided_slice %16 {offsets = [28, 0], sizes = [4, 256], strides = [1, 1]} : vector<36x256xf32> to vector<4x256xf32>
    %c240_i32_25 = arith.constant 240 : i32
    %52 = tpu.dynamic_rotate %51 by %c240_i32_25 dim 1 : vector<4x256xf32>, i32 -> vector<4x256xf32>
    %53 = arith.addf %50, %52 : vector<4x256xf32>
    %54 = vector.extract_strided_slice %16 {offsets = [32, 0], sizes = [4, 256], strides = [1, 1]} : vector<36x256xf32> to vector<4x256xf32>
    %c240_i32_26 = arith.constant 240 : i32
    %55 = tpu.dynamic_rotate %54 by %c240_i32_26 dim 1 : vector<4x256xf32>, i32 -> vector<4x256xf32>
    %c255_i32_27 = arith.constant 255 : i32
    %56 = tpu.dynamic_rotate %55 by %c255_i32_27 dim 1 : vector<4x256xf32>, i32 -> vector<4x256xf32>
    %c15_i32_28 = arith.constant 15 : i32
    %57 = tpu.dynamic_rotate %55 by %c15_i32_28 dim 1 : vector<4x256xf32>, i32 -> vector<4x256xf32>
    %58 = arith.select %11, %57, %56 : vector<4x256xi1>, vector<4x256xf32>
    %59 = arith.addf %53, %58 : vector<4x256xf32>
    %60 = math.tanh %59 : vector<4x256xf32>
    %61 = arith.mulf %1, %13 : vector<4x256xf32>
    %62 = arith.subf %60, %61 : vector<4x256xf32>
    %63 = arith.mulf %3, %15 : vector<4x256xf32>
    %64 = arith.subf %62, %63 : vector<4x256xf32>
    %cst_29 = arith.constant 5.000000e-02 : f32
    %65 = vector.broadcast %cst_29 : f32 to vector<4x256xf32>
    %66 = arith.mulf %65, %64 : vector<4x256xf32>
    %67 = arith.addf %15, %66 : vector<4x256xf32>
    %cst_30 = arith.constant 5.000000e-02 : f32
    %68 = vector.broadcast %cst_30 : f32 to vector<4x256xf32>
    %69 = arith.mulf %68, %67 : vector<4x256xf32>
    %70 = arith.addf %13, %69 : vector<4x256xf32>
    %c0_31 = arith.constant 0 : index
    %c0_32 = arith.constant 0 : index
    %c0_33 = arith.constant 0 : index
    %71 = vector.load %arg6[%c0_31, %c0_32, %c0_33] : memref<1x4x256xf32, #tpu.memory_space<vmem>>, vector<1x4x256xf32>
    %72 = vector.shape_cast %71 : vector<1x4x256xf32> to vector<4x256xf32>
    %73 = vector.shape_cast %70 : vector<4x256xf32> to vector<1x4x256xf32>
    tpu.vector_store %arg6[%c0_31, %c0_32, %c0_33], %73 {strides = array<i32>} : memref<1x4x256xf32, #tpu.memory_space<vmem>>, vector<1x4x256xf32>,
    %c0_34 = arith.constant 0 : index
    %c0_35 = arith.constant 0 : index
    %c0_36 = arith.constant 0 : index
    %74 = vector.load %arg7[%c0_34, %c0_35, %c0_36] : memref<1x4x256xf32, #tpu.memory_space<vmem>>, vector<1x4x256xf32>
    %75 = vector.shape_cast %74 : vector<1x4x256xf32> to vector<4x256xf32>
    %76 = vector.shape_cast %67 : vector<4x256xf32> to vector<1x4x256xf32>
    tpu.vector_store %arg7[%c0_34, %c0_35, %c0_36], %76 {strides = array<i32>} : memref<1x4x256xf32, #tpu.memory_space<vmem>>, vector<1x4x256xf32>,
    return
  }
  func.func @transform_0(%arg0: i32) -> (i32, i32) {
    %c0_i32 = arith.constant 0 : i32
    %c0_i32_0 = arith.constant 0 : i32
    %c0_i32_1 = arith.constant 0 : i32
    return %c0_i32, %c0_i32_0 : i32, i32
  }
  func.func @transform_1(%arg0: i32) -> (i32, i32, i32) {
    %c0_i32 = arith.constant 0 : i32
    %c0_i32_0 = arith.constant 0 : i32
    %c0_i32_1 = arith.constant 0 : i32
    return %arg0, %c0_i32, %c0_i32_0 : i32, i32, i32
  }
  func.func @transform_2(%arg0: i32) -> (i32, i32, i32) {
    %c0_i32 = arith.constant 0 : i32
    %c0_i32_0 = arith.constant 0 : i32
    %c0_i32_1 = arith.constant 0 : i32
    return %arg0, %c0_i32, %c0_i32_0 : i32, i32, i32
  }
  func.func @transform_3(%arg0: i32) -> (i32, i32, i32) {
    %c0_i32 = arith.constant 0 : i32
    %c0_i32_0 = arith.constant 0 : i32
    %c0_i32_1 = arith.constant 0 : i32
    return %arg0, %c0_i32, %c0_i32_0 : i32, i32, i32
  }
  func.func @transform_4(%arg0: i32) -> (i32, i32, i32) {
    %c0_i32 = arith.constant 0 : i32
    %c0_i32_0 = arith.constant 0 : i32
    %c0_i32_1 = arith.constant 0 : i32
    return %arg0, %c0_i32, %c0_i32_0 : i32, i32, i32
  }
  func.func @transform_5(%arg0: i32) -> (i32, i32, i32) {
    %c0_i32 = arith.constant 0 : i32
    %c0_i32_0 = arith.constant 0 : i32
    %c0_i32_1 = arith.constant 0 : i32
    return %arg0, %c0_i32, %c0_i32_0 : i32, i32, i32
  }
  func.func @transform_6(%arg0: i32) -> (i32, i32, i32) {
    %c0_i32 = arith.constant 0 : i32
    %c0_i32_0 = arith.constant 0 : i32
    %c0_i32_1 = arith.constant 0 : i32
    return %arg0, %c0_i32, %c0_i32_0 : i32, i32, i32
  }
}

</mosaic_0001>

<bundles_post_ra>
// kernel: tpu_custom_call.1
= control target key start
LH: loop header
LB: loop body
LE: loop exit
PB: predicated region body
PF: predicated region fallthrough
CT: control target
= control target key end

     0   :  { %12 = vsyncpa [#allocation3], 0  ;;  %s2247_s0 = inlined_call_operand.vmem [shape: f32[36,4], index: 0, kind: input, shape index: {}]   ;;  %s2248_s1 = inlined_call_operand.vmem [shape: f32[2,4,256], index: 1, kind: input, shape index: {}]   ;;  %s2249_s2 = inlined_call_operand.vmem [shape: f32[2,4,256], index: 2, kind: input, shape index: {}]   ;;  %s2250_s3 = inlined_call_operand.vmem [shape: f32[2,4,256], index: 3, kind: input, shape index: {}]   ;;  %s2251_s4 = inlined_call_operand.hbm [shape: f32[2,4,256], index: 4, kind: input, shape index: {}]   ;;  %s2252_s5 = inlined_call_operand.hbm [shape: f32[2,4,256], index: 5, kind: output, shape index: {0}]   ;;  %s2253_s6 = inlined_call_operand.hbm [shape: f32[2,4,256], index: 6, kind: output, shape index: {1}]  }
   0x1   :  { %14 = vsyncpa [#allocation3 + $0x1], 0 }
   0x2   :  { %15 = vsyncpa [#allocation4], 0 }
   0x3   :  { %17 = vsyncpa [#allocation4 + $0x1], 0 }
   0x4   :  { %18 = vsyncpa [#allocation7], 0 }
   0x5   :  { %20 = vsyncpa [#allocation7 + $0x1], 0  ;;  %s1724_s21 = smov 0   ;;  %s1726_s22 = smov 0  }
   0x6   :  { %s1728_s23 = smov 0   ;;  %s1730_s24 = smov 0  }
   0x7 LB: > { %s1745_s25 = sadd.s32 4294967295, %s1677_s24   ;;  %s1406_s26 = sadd.s32 4294967294, %s1677_s24   ;;  %s1677_s24 = sphi %s1730_s24, %s2278_s24   ;;  %s1673_s23 = sphi %s1728_s23, %s2277_s23   ;;  %s1669_s22 = sphi %s1726_s22, %s2276_s22   ;;  %s1665_s21 = sphi %s1724_s21, %s2275_s21  }
   0x8   : > { %s1749_s27 = sadd.s32 1, %s1677_s24   ;;  %s132_s28 = sadd.s32 1, %s1673_s23 }
   0x9   : > { %s129_s29 = ssub.s32 %s1677_s24, %s1749_s27  ;;  %p139_p0 = scmp.ne.s32.totalorder %s1673_s23, %s1669_s22 }
   0xa   : > { %p130_p1 = scmp.eq.s32.totalorder %s129_s29, 0  ;;  %p140_p2 = scmp.eq.s32.totalorder %s1677_s24, 0 }
   0xb   : > { %p145_p3 = scmp.ne.s32.totalorder %s1669_s22, %s1665_s21  ;;  %p146_p4 = scmp.eq.s32.totalorder %s1745_s25, 0 }
   0xc   : > { %s1761_s30 = scalar_select %p130_p1, %s1673_s23, %s132_s28  }
   0xd   : > { %p1763_p5 = por %p140_p2, %p139_p0  ;;  %p1767_p6 = por %p146_p4, %p145_p3 }
   0xe   : > { %p169_p7 = scmp.eq.s32.totalorder %s1745_s25, 1  ;;  %p175_p8 = scmp.eq.s32.totalorder %s1406_s26, 1 }
   0xf   : > { %p1503_p10 = scmp.lt.s32.totalorder %s1677_s24, 2  ;;  %s248_s11 = sand.u32 1, %s1673_s23  }
  0x10   : > { %p1774_p11 = por %p169_p7, %p139_p0  ;;  %p1778_p12 = por %p175_p8, %p145_p3 }
  0x11   : > { %s1430_s12 = sshll.u32 %s1677_s24, 7  ;;  %s1409_s13 = sshll.u32 %s248_s11, 3 }
  0x12   : > { %s2258_s9 = scalar_select %p1774_p11, 1, 0 }
  0x13   : > { %s2259_s10 = scalar_select %p1778_p12, 1, 0 }
  0x14   : > { %s1787_s16 = scalar_lea.hbm %s2251_s4, %s1430_s12  ;;  %s252_s17 = scalar_lea.vmem [#allocation2], %s1409_s13 }
  0x15   : > { %s260_s18 = sshll.u32 %s252_s17, 4  ;;  %p1791_p13 = pnand %p1503_p10, %p1763_p5  ;;  %s1795_s18 = int_to_ptr.vmem [resolvable:$true] %s260_s18 }
  0x16   : > { %s249_s20 = scalar_lea.sflag [#allocation3], %s248_s11  ;;  %s1549_s26 = scalar_lea.hbm %s1787_s16, 128 }
  0x17   : > { %p1550_p2 = scmp.ne.s32.totalorder %s1787_s16, %s1549_s26  ;;  %p1551_p3 = pneg %p1791_p13 }
  0x18   : > { %s1554_s7 = scalar_lea.hbm %s2251_s4, 256  ;;  %p1555_p5 = scmp.lt.u32.totalorder %s1787_s16, %s2251_s4 }
  0x19   : > { %p1552_p4 = pnand %p1551_p3, %p1550_p2  ;;  %p1556_p8 = scmp.lt.u32.totalorder %s1554_s7, %s1549_s26 }
  0x1a   : > { %p1558_p9 = scmp.lt.u32.totalorder %s1549_s26, %s1787_s16 }
  0x1b   : > { %p1553_p7 = pneg %p1552_p4  ;;  %p1557_p10 = por %p1556_p8, %p1555_p5 }
  0x1d   : > { %p1559_p0 = por %p1558_p9, %p1557_p10 }
  0x1f   : > { %p1560_p1 = pnand %p1559_p0, %p1553_p7 }
  0x21   : > { %1563 = shalt.err (!%p1560_p1)
}
  0x22   : > { %s1564_s11 = scalar_lea.vmem %s1795_s18, 128  ;;  %s1679_s14 = smov [#allocation2]  }
  0x23   : > { %p1565_p2 = scmp.ne.s32.totalorder %s1795_s18, %s1564_s11  ;;  %s1569_s15 = sshll.u32 %s1679_s14, 4  ;;  %s1570_s15 = int_to_ptr.vmem [resolvable:$false] %s1569_s15 }
  0x24   : > { %s1571_s17 = scalar_lea.vmem %s1570_s15, 256  ;;  %p1572_p11 = scmp.lt.s32.totalorder %s1795_s18, %s1570_s15 }
  0x25   : > { %p1567_p4 = pnand %p1565_p2, %p1551_p3  ;;  %p1573_p5 = scmp.lt.s32.totalorder %s1571_s17, %s1564_s11 }
  0x27   : > { %p1568_p12 = pneg %p1567_p4  ;;  %p1574_p8 = por %p1573_p5, %p1572_p11 }
  0x29   : > { %p1575_p9 = pnand %p1574_p8, %p1568_p12 }
  0x2b   : > { %1578 = shalt.err (!%p1575_p9)
}
  0x2c   : > { %1495 = dma.hbm_to_vmem [thread:$0]  (!%p1791_p13), %s1787_s16, 128, %s1795_s18, %s249_s20  }
  0x2d   : > { %p2261_p0 = scmp.lt.s32.totalorder %s1677_s24, 3  ;;  %p2262_p1 = scmp.ge.s32.totalorder %s1677_s24, 1 }
  0x2f   : > { %p266_p3 = pnand %p2262_p1, %p2261_p0 }
  0x30   : > { %s1829_s26 = sand.u32 (!%p266_p3), 1, %s1669_s22  }
  0x31   : > { %269 = sbr.rel (%p266_p3) target bundleno = 654 (0x28e), region = 40  ;;  %s1832_s28 = sshll.u32 (!%p266_p3), %s1829_s26, 3 }
  0x32   : > { %s272_s29 = scalar_lea.sflag (!%p266_p3), [#allocation3], %s1829_s26  ;;  %s275_s19 = scalar_lea.vmem (!%p266_p3), [#allocation2], %s1832_s28 }
  0x38   : > { %1652 = dma.done.wait (%p1767_p6), %s272_s29, 128  }
  0x39   : > { %1654 = vsyncadd (%p1767_p6), %s272_s29, 4294967168  ;;  %p324_p11 = scmp.lt.s32.totalorder %s1745_s25, 1  ;;  %v1680_v0 = vmov 0.0   ;;  %vm375_vm0 = vcmask 1043456   ;;  %vm359_vm1 = vcmask 31744   ;;  %v341_v2 = vld [vmem:[%s2247_s0] sm:$0xff] }
  0x3a   : > { %787 = vmatprep.mubr.f32.mxu0 %v1680_v0  ;;  %446 = vmatprep.mubr.f32.mxu1 %v1680_v0  ;;  %v342_v3 = vld [vmem:[%s2247_s0 + $0x8] sm:$0xff]  ;;  %v361_v6 = vsel %vm359_vm1, %v341_v2, 0  ;;  %v343_v8 = vld [vmem:[%s2247_s0 + $0x10] sm:$0xff]  ;;  %v344_v9 = vld [vmem:[%s2247_s0 + $0x18] sm:$0xff]  ;;  %s1682_s8 = smov 112   ;;  %s1683_s13 = smov 1  }
  0x3b   : > { %s325_s16 = scalar_select %p324_p11, %s1745_s25, 1  ;;  %v364_v7 = vsel %vm359_vm1, %v342_v3, 0  ;;  %v1872_v11 = vand.u32 4294901760, %v361_v6  ;;  %v367_v13 = vsel %vm359_vm1, %v343_v8, 0  ;;  %v345_v14 = vld [vmem:[%s2247_s0 + $0x20] sm:$0xf] }
  0x3c   : > { %v1874_v12 = vand.u32 4294901760, %v364_v7  ;;  %v1881_v16 = vand.u32 4294901760, %v367_v13  ;;  %v370_v17 = vsel %vm359_vm1, %v344_v9, 0  ;;  %v373_v18 = vsel %vm359_vm1, %v345_v14, 0  ;;  %s1684_s11 = smov 113   ;;  %s1685_s14 = smov 127  }
  0x3d   : > { %s1844_s18 = sshll.u32 %s325_s16, 3  ;;  %v1889_v21 = vsub.f32 %v361_v6, %v1872_v11  ;;  %v1897_v24 = vand.u32 4294901760, %v370_v17  ;;  %v1908_v31 = vand.u32 4294901760, %v373_v18  ;;  %s1686_s15 = smov 15  }
  0x3e   : > { %s338_s12 = scalar_lea.vmem %s2250_s3, %s1844_s18  ;;  %v1892_v22 = vsub.f32 %v364_v7, %v1874_v12  ;;  %v1895_v23 = vsub.f32 %v367_v13, %v1881_v16  ;;  %s328_s16 = scalar_lea.vmem %s2248_s1, %s1844_s18 }
  0x3f   : > { %v1850_v1 = vld [vmem:[%s338_s12] sm:$0xff]  ;;  %v449_v25 = vand.u32 4294901760, %v1889_v21  ;;  %v1906_v30 = vsub.f32 %v370_v17, %v1897_v24  ;;  %v1915_v39 = vsub.f32 %v373_v18, %v1908_v31  ;;  %s1681_s12 = smov 16   ;;  %s1240_s29 = scalar_lea.sflag [#allocation7], %s1829_s26 }
  0x40   : > { %v358_v4 = vcombine.high %v1850_v1, %v1850_v1  ;;  %v376_v5 = vsel %vm375_vm0, %v1850_v1, 0  ;;  %v460_v26 = vand.u32 4294901760, %v1892_v22  ;;  %v471_v29 = vand.u32 4294901760, %v1895_v23  ;;  %p2271_p12 = scmp.ne.s32.totalorder %s2258_s9, 0  ;;  %s1687_s20 = smov [#allocation6]  }
  0x41   : > { %v1870_v10 = vand.u32 4294901760, %v376_v5  ;;  %v450_v32 = vsub.f32 %v1889_v21, %v449_v25  ;;  %v482_v43 = vand.u32 4294901760, %v1906_v30  ;;  %v493_v46 = vand.u32 4294901760, %v1915_v39  ;;  %s1583_s7 = sshll.u32 %s1687_s20, 4  ;;  %s1584_s7 = int_to_ptr.vmem [resolvable:$false] %s1583_s7 }
  0x42   : > { %v378_v15 = vsel %vm375_vm0, %v358_v4, 0  ;;  %v461_v35 = vsub.f32 %v1892_v22, %v460_v26  ;;  %v472_v42 = vsub.f32 %v1895_v23, %v471_v29 }
  0x43   : > { %v380_v19 = vand.u32 4294901760, %v378_v15  ;;  %v1886_v20 = vsub.f32 %v376_v5, %v1870_v10  ;;  %v451_v36 = vand.u32 4294901760, %v450_v32  ;;  %v483_v45 = vsub.f32 %v1906_v30, %v482_v43 }
  0x44   : > { %v462_v41 = vand.u32 4294901760, %v461_v35  ;;  %v473_v44 = vand.u32 4294901760, %v472_v42  ;;  %v494_v48 = vsub.f32 %v1915_v39, %v493_v46 }
  0x45   : > { %722 = vmatprep.subr.mxu0 %v380_v19  ;;  %381 = vmatprep.subr.mxu1 %v380_v19  ;;  %v503_v27 = vsub.f32 %v378_v15, %v380_v19  ;;  %v510_v28 = vand.u32 4294901760, %v1886_v20  ;;  %v484_v47 = vand.u32 4294901760, %v483_v45 }
  0x46   : > { %724 = vmatpush1.msra.mxu0 %v1870_v10  ;;  %383 = vmatpush1.msra.mxu1 %v1870_v10  ;;  %v495_v49 = vand.u32 4294901760, %v494_v48 }
  0x47   : > { %791 = vmatmul.mubr.f32.vlgmr.msra.gmra.mrb[0].mxu0 %v449_v25  ;;  %v504_v33 = vand.u32 4294901760, %v503_v27  ;;  %v511_v34 = vsub.f32 %v1886_v20, %v510_v28  ;;  %452 = vmatmul.mubr.f32.vlgmr.msra.gmra.mrb[0].mxu1 %v451_v36  ;;  %v346_v25 = vlaneseq }
  0x48   : > { %796 = vmatprep.mubr.f32.mxu0 %v1680_v0  ;;  %457 = vmatprep.mubr.f32.mxu1 %v1680_v0 }
  0x49   : > { %v505_v37 = vsub.f32 %v503_v27, %v504_v33  ;;  %836 = vmatprep.subr.mxu0 %v504_v33  ;;  %v512_v38 = vand.u32 4294901760, %v511_v34 }
  0x4a   : > { %840 = vmatpush1.msra.mxu0 %v510_v28 }
  0x4b   : > { %800 = vmatmul.mubr.f32.gmra.mrb[2].mxu0 %v460_v26  ;;  %v506_v40 = vand.u32 4294901760, %v505_v37  ;;  %940 = vmatprep.subr.mxu0 %v380_v19  ;;  %v1997_v26 = vand.u32 127, %v346_v25 }
  0x4c   : > { %805 = vmatprep.mubr.f32.mxu0 %v1680_v0  ;;  %463 = vmatmul.mubr.f32.gmra.mrb[2].mxu1 %v462_v41 }
  0x4d   : > { %507 = vmatprep.subr.mxu1 %v506_v40  ;;  %468 = vmatprep.mubr.f32.mxu1 %v1680_v0  ;;  %vm1045_vm2 = vcmp.lt.s32.totalorder %v1997_v26, 16  ;;  %vm1154_vm3 = vcmp.lt.s32.totalorder %v1997_v26, 112  ;;  %vm1052_vm4 = vcmp.lt.s32.totalorder %v1997_v26, 1  ;;  %vm1059_vm7 = vcmp.lt.s32.totalorder %v1997_v26, 113 }
  0x4e   : > { %513 = vmatpush1.msra.mxu1 %v512_v38  ;;  %vm1090_vm8 = vcmp.lt.s32.totalorder %v1997_v26, 127  ;;  %vm1097_vm11 = vcmp.lt.s32.totalorder %v1997_v26, 15 }
  0x4f   : > { %809 = vmatmul.mubr.f32.gmra.mrb[4].mxu0 %v471_v29  ;;  %614 = vmatprep.subr.mxu1 %v503_v27 }
  0x50   : > { %814 = vmatprep.mubr.f32.mxu0 %v1680_v0  ;;  %474 = vmatmul.mubr.f32.gmra.mrb[4].mxu1 %v473_v44 }
  0x51   : > { %479 = vmatprep.mubr.f32.mxu1 %v1680_v0 }
  0x53   : > { %818 = vmatmul.mubr.f32.gmra.mrb[6].mxu0 %v482_v43 }
  0x54   : > { %823 = vmatprep.mubr.f32.mxu0 %v1680_v0  ;;  %485 = vmatmul.mubr.f32.gmra.mrb[6].mxu1 %v484_v47 }
  0x55   : > { %490 = vmatprep.mubr.f32.mxu1 %v1680_v0 }
  0x57   : > { %827 = vmatmul.mubr.f32.gmra.mrb[8].mxu0 %v493_v46 }
  0x58   : > { %903 = vmatprep.mubr.f32.mxu0 %v1680_v0  ;;  %496 = vmatmul.mubr.f32.gmra.mrb[8].mxu1 %v495_v49 }
  0x59   : > { %576 = vmatprep.mubr.f32.mxu1 %v1680_v0 }
  0x5b   : > { %905 = vmatmul.mubr.f32.vlgmr.msra.gmra.mrb[0].mxu0 %v1872_v11 }
  0x5c   : > { %910 = vmatprep.mubr.f32.mxu0 %v1680_v0  ;;  %942 = vmatpush1.msra.mxu0 %v1870_v10 }
  0x5d   : > { %578 = vmatmul.mubr.f32.vlgmr.msra.gmra.mrb[0].mxu1 %v1872_v11 }
  0x5e   : > { %583 = vmatprep.mubr.f32.mxu1 %v1680_v0  ;;  %617 = vmatpush1.msra.mxu1 %v1886_v20 }
  0x5f   : > { %912 = vmatmul.mubr.f32.gmra.mrb[2].mxu0 %v1874_v12 }
  0x60   : > { %917 = vmatprep.mubr.f32.mxu0 %v1680_v0 }
  0x61   : > { %585 = vmatmul.mubr.f32.gmra.mrb[2].mxu1 %v1874_v12 }
  0x62   : > { %590 = vmatprep.mubr.f32.mxu1 %v1680_v0 }
  0x63   : > { %919 = vmatmul.mubr.f32.gmra.mrb[4].mxu0 %v1881_v16 }
  0x64   : > { %924 = vmatprep.mubr.f32.mxu0 %v1680_v0 }
  0x65   : > { %592 = vmatmul.mubr.f32.gmra.mrb[4].mxu1 %v1881_v16 }
  0x66   : > { %597 = vmatprep.mubr.f32.mxu1 %v1680_v0 }
  0x67   : > { %926 = vmatmul.mubr.f32.gmra.mrb[6].mxu0 %v1897_v24 }
  0x68   : > { %931 = vmatprep.mubr.f32.mxu0 %v1680_v0 }
  0x69   : > { %599 = vmatmul.mubr.f32.gmra.mrb[6].mxu1 %v1897_v24 }
  0x6a   : > { %604 = vmatprep.mubr.f32.mxu1 %v1680_v0 }
  0x6b   : > { %933 = vmatmul.mubr.f32.gmra.mrb[8].mxu0 %v1908_v31 }
  0x6c   : > { %1005 = vmatprep.mubr.f32.mxu0 %v1680_v0 }
  0x6d   : > { %606 = vmatmul.mubr.f32.gmra.mrb[8].mxu1 %v1908_v31 }
  0x6e   : > { %680 = vmatprep.mubr.f32.mxu1 %v1680_v0 }
  0x6f   : > { %1007 = vmatmul.mubr.f32.vlgmr.msra.gmra.mrb[0].mxu0 %v1872_v11 }
  0x70   : > { %1012 = vmatprep.mubr.f32.mxu0 %v1680_v0 }
  0x71   : > { %683 = vmatmul.mubr.f32.vlgmr.msra.gmra.mrb[0].mxu1 %v1889_v21 }
  0x72   : > { %688 = vmatprep.mubr.f32.mxu1 %v1680_v0 }
  0x73   : > { %1014 = vmatmul.mubr.f32.gmra.mrb[2].mxu0 %v1874_v12 }
  0x74   : > { %1019 = vmatprep.mubr.f32.mxu0 %v1680_v0 }
  0x75   : > { %691 = vmatmul.mubr.f32.gmra.mrb[2].mxu1 %v1892_v22 }
  0x76   : > { %696 = vmatprep.mubr.f32.mxu1 %v1680_v0 }
  0x77   : > { %1021 = vmatmul.mubr.f32.gmra.mrb[4].mxu0 %v1881_v16 }
  0x78   : > { %1026 = vmatprep.mubr.f32.mxu0 %v1680_v0 }
  0x79   : > { %699 = vmatmul.mubr.f32.gmra.mrb[4].mxu1 %v1895_v23 }
  0x7a   : > { %704 = vmatprep.mubr.f32.mxu1 %v1680_v0 }
  0x7b   : > { %1028 = vmatmul.mubr.f32.gmra.mrb[6].mxu0 %v1897_v24 }
  0x7c   : > { %1033 = vmatprep.mubr.f32.mxu0 %v1680_v0 }
  0x7d   : > { %707 = vmatmul.mubr.f32.gmra.mrb[6].mxu1 %v1906_v30 }
  0x7e   : > { %712 = vmatprep.mubr.f32.mxu1 %v1680_v0 }
  0x7f   : > { %1035 = vmatmul.mubr.f32.gmra.mrb[8].mxu0 %v1908_v31 }
  0x81   : > { %715 = vmatmul.mubr.f32.gmra.mrb[8].mxu1 %v1915_v39 }
 0x142   : > { %v1008_v50 = vpop.f32.mrb[0].mxu0 }
 0x143   : > { %v1010_v51 = vpop.f32.mrb[1].mxu0 }
 0x144   : > { %v684_v52 = vpop.f32.mrb[0].mxu1 }
 0x145   : > { %v1436_v54 = vadd.f32 %v1008_v50, %v684_v52  ;;  %v686_v55 = vpop.f32.mrb[1].mxu1 }
 0x146   : > { %v1015_v53 = vpop.f32.mrb[2].mxu0  ;;  %v1437_v57 = vadd.f32 %v1010_v51, %v686_v55 }
 0x147   : > { %v1017_v56 = vpop.f32.mrb[3].mxu0  ;;  %1041 = vrot.lane.b32.xlu0 %v1436_v54, %s1681_s12  ;;  %v1068_v17 = vrot.slane %v1436_v54, 4 }
 0x148   : > { %v692_v58 = vpop.f32.mrb[2].mxu1  ;;  %v1069_v18 = vrot.slane %v1437_v57, 4 }
 0x149   : > { %v1438_v60 = vadd.f32 %v1015_v53, %v692_v58  ;;  %v694_v61 = vpop.f32.mrb[3].mxu1  ;;  %v348_v53 = vadd.s32 128, %v1997_v26 }
 0x14a   : > { %v1022_v59 = vpop.f32.mrb[4].mxu0  ;;  %v1439_v63 = vadd.f32 %v1017_v56, %v694_v61  ;;  %v349_v56 = vand.u32 15, %v1997_v26 }
 0x14b   : > { %v1024_v62 = vpop.f32.mrb[5].mxu0  ;;  %1043 = vrot.lane.b32.xlu0 %v1437_v57, %s1681_s12  ;;  %1080 = vrot.lane.b32.xlu1 %v1438_v60, %s1681_s12  ;;  %v1106_v19 = vrot.slane %v1438_v60, 4  ;;  %v350_v57 = vand.u32 15, %v348_v53 }
 0x14c   : > { %v700_v0 = vpop.f32.mrb[4].mxu1  ;;  %v1107_v20 = vrot.slane %v1439_v63, 4  ;;  %vm2040_vm5 = vcmp.eq.s32.totalorder %v349_v56, 0  ;;  %vm2066_vm9 = vcmp.eq.s32.totalorder %v349_v56, 15 }
 0x14d   : > { %v1974_v3 = vadd.f32 %v1022_v59, %v700_v0  ;;  %v702_v4 = vpop.f32.mrb[5].mxu1  ;;  %vm2044_vm6 = vcmp.eq.s32.totalorder %v350_v57, 0  ;;  %vm2074_vm10 = vcmp.eq.s32.totalorder %v350_v57, 15 }
 0x14e   : > { %v1029_v2 = vpop.f32.mrb[6].mxu0  ;;  %v1976_v6 = vadd.f32 %v1024_v62, %v702_v4 }
 0x14f   : > { %v1031_v5 = vpop.f32.mrb[7].mxu0  ;;  %1082 = vrot.lane.b32.xlu1 %v1439_v63, %s1681_s12  ;;  %v1130_v21 = vrot.slane %v1974_v3, 4 }
 0x150   : > { %v708_v7 = vpop.f32.mrb[6].mxu1  ;;  %v1131_v22 = vrot.slane %v1976_v6, 4 }
 0x151   : > { %v1442_v9 = vadd.f32 %v1029_v2, %v708_v7  ;;  %v710_v10 = vpop.f32.mrb[7].mxu1 }
 0x152   : > { %v1036_v8 = vpop.f32.mrb[8].mxu0  ;;  %v1443_v12 = vadd.f32 %v1031_v5, %v710_v10 }
 0x153   : > { %v1038_v11 = vpop.f32.mrb[9].mxu0  ;;  %1150 = vrot.lane.b32.xlu0 %v1442_v9, %s1682_s8  ;;  %v1175_v23 = vrot.slane %v1442_v9, 4 }
 0x154   : > { %1152 = vrot.lane.b32.xlu1 %v1443_v12, %s1682_s8  ;;  %v716_v13 = vpop.f32.mrb[8].mxu1  ;;  %v1176_v24 = vrot.slane %v1443_v12, 4 }
 0x155   : > { %v1444_v14 = vadd.f32 %v1036_v8, %v716_v13  ;;  %v718_v15 = vpop.f32.mrb[9].mxu1 }
 0x156   : > { %v1445_v16 = vadd.f32 %v1038_v11, %v718_v15 }
 0x157   : > { %1187 = vrot.lane.b32.xlu0 %v1444_v14, %s1682_s8 }
 0x158   : > { %1189 = vrot.lane.b32.xlu1 %v1445_v16, %s1682_s8 }
 0x15b   : > { %1072 = vrot.lane.b32.xlu0 %v1068_v17, %s1681_s12 }
 0x15c   : > { %1074 = vrot.lane.b32.xlu1 %v1069_v18, %s1681_s12  ;;  %s333_s12 = scalar_lea.vmem %s2249_s2, %s1844_s18  ;;  %s1434_s18 = sshll.u32 %s1745_s25, 7 }
 0x15d   : > { %v340_v26 = vld [vmem:[%s333_s12] sm:$0xff]  ;;  %s1585_s12 = scalar_lea.vmem %s1584_s7, 256 }
 0x15f   : > { %1110 = vrot.lane.b32.xlu0 %v1106_v19, %s1683_s13 }
 0x160   : > { %1112 = vrot.lane.b32.xlu1 %v1107_v20, %s1683_s13 }
 0x163   : > { %1116 = vrot.lane.b32.xlu0 %v1106_v19, %s1684_s11 }
 0x164   : > { %1118 = vrot.lane.b32.xlu1 %v1107_v20, %s1684_s11 }
 0x167   : > { %1134 = vrot.lane.b32.xlu0 %v1130_v21, %s1685_s14 }
 0x168   : > { %1136 = vrot.lane.b32.xlu1 %v1131_v22, %s1685_s14 }
 0x16b   : > { %1140 = vrot.lane.b32.xlu0 %v1130_v21, %s1686_s15 }
 0x16c   : > { %1142 = vrot.lane.b32.xlu1 %v1131_v22, %s1686_s15 }
 0x16f   : > { %1179 = vrot.lane.b32.xlu0 %v1175_v23, %s1682_s8 }
 0x170   : > { %1181 = vrot.lane.b32.xlu1 %v1176_v24, %s1682_s8 }
 0x1b9   : > { %v1042_v27 = vpop.permute.xlu0 %1041 }
 0x1bd   : > { %v1044_v28 = vpop.permute.xlu0 %1043  ;;  %v1081_v29 = vpop.permute.xlu1 %1080 }
 0x1be   : > { %v1047_v30 = vsel %vm1045_vm2, %v1044_v28, %v1042_v27  ;;  %v1046_v31 = vsel %vm1045_vm2, %v1042_v27, %v1044_v28 }
 0x1bf   : > { %1048 = vrot.lane.b32.xlu0 %v1047_v30, %s1683_s13  ;;  %1050 = vrot.lane.b32.xlu1 %v1046_v31, %s1683_s13 }
 0x1c1   : > { %v1083_v32 = vpop.permute.xlu1 %1082 }
 0x1c2   : > { %v1085_v33 = vsel %vm1045_vm2, %v1083_v32, %v1081_v29  ;;  %v1084_v34 = vsel %vm1045_vm2, %v1081_v29, %v1083_v32 }
 0x1c3   : > { %1055 = vrot.lane.b32.xlu0 %v1047_v30, %s1684_s11  ;;  %1057 = vrot.lane.b32.xlu1 %v1046_v31, %s1684_s11 }
 0x1c5   : > { %v1151_v35 = vpop.permute.xlu0 %1150 }
 0x1c6   : > { %v1153_v36 = vpop.permute.xlu1 %1152 }
 0x1c7   : > { %1086 = vrot.lane.b32.xlu0 %v1085_v33, %s1685_s14  ;;  %1088 = vrot.lane.b32.xlu1 %v1084_v34, %s1685_s14  ;;  %v1155_v37 = vsel %vm1154_vm3, %v1151_v35, %v1153_v36  ;;  %v1156_v38 = vsel %vm1154_vm3, %v1153_v36, %v1151_v35 }
 0x1c9   : > { %v1188_v39 = vpop.permute.xlu0 %1187 }
 0x1ca   : > { %v1190_v40 = vpop.permute.xlu1 %1189 }
 0x1cb   : > { %1093 = vrot.lane.b32.xlu0 %v1085_v33, %s1686_s15  ;;  %1095 = vrot.lane.b32.xlu1 %v1084_v34, %s1686_s15  ;;  %v1192_v41 = vsel %vm1154_vm3, %v1190_v40, %v1188_v39  ;;  %v1191_v42 = vsel %vm1154_vm3, %v1188_v39, %v1190_v40 }
 0x1cd   : > { %v1073_v43 = vpop.permute.xlu0 %1072 }
 0x1ce   : > { %v1075_v44 = vpop.permute.xlu1 %1074 }
 0x1cf   : > { %1157 = vrot.lane.b32.xlu0 %v1155_v37, %s1683_s13  ;;  %1159 = vrot.lane.b32.xlu1 %v1156_v38, %s1683_s13  ;;  %v1076_v7 = vsel %vm1045_vm2, %v1073_v43, %v1075_v44  ;;  %v1077_v8 = vsel %vm1045_vm2, %v1075_v44, %v1073_v43 }
 0x1d1   : > { %v1111_v45 = vpop.permute.xlu0 %1110 }
 0x1d2   : > { %v1113_v46 = vpop.permute.xlu1 %1112 }
 0x1d3   : > { %1163 = vrot.lane.b32.xlu0 %v1155_v37, %s1684_s11  ;;  %1165 = vrot.lane.b32.xlu1 %v1156_v38, %s1684_s11  ;;  %v1114_v28 = vsel %vm1052_vm4, %v1111_v45, %v1113_v46  ;;  %v1115_v29 = vsel %vm1052_vm4, %v1113_v46, %v1111_v45 }
 0x1d5   : > { %v1117_v47 = vpop.permute.xlu0 %1116 }
 0x1d6   : > { %v1119_v48 = vpop.permute.xlu1 %1118 }
 0x1d7   : > { %1195 = vrot.lane.b32.xlu1 %v1192_v41, %s1685_s14  ;;  %1193 = vrot.lane.b32.xlu0 %v1191_v42, %s1685_s14  ;;  %v1120_v16 = vsel %vm1059_vm7, %v1117_v47, %v1119_v48  ;;  %v1121_v17 = vsel %vm1059_vm7, %v1119_v48, %v1117_v47  ;;  %s2163_s14 = scalar_lea.hbm %s2253_s6, %s1434_s18 }
 0x1d8   : > { %v1122_v32 = vsel %vm2040_vm5, %v1120_v16, %v1115_v29  ;;  %v1123_v33 = vsel %vm2044_vm6, %v1121_v17, %v1114_v28 }
 0x1d9   : > { %v1135_v49 = vpop.permute.xlu0 %1134 }
 0x1da   : > { %v1137_v50 = vpop.permute.xlu1 %1136 }
 0x1db   : > { %1201 = vrot.lane.b32.xlu1 %v1192_v41, %s1686_s15  ;;  %1199 = vrot.lane.b32.xlu0 %v1191_v42, %s1686_s15  ;;  %v1138_v40 = vsel %vm1090_vm8, %v1135_v49, %v1137_v50  ;;  %v1139_v41 = vsel %vm1090_vm8, %v1137_v50, %v1135_v49  ;;  %s2255_s15 = scalar_lea.vmem [#allocation5], %s1832_s28 }
 0x1dc   : > { %s2170_s17 = sshll.u32 %s2255_s15, 4  ;;  %s2203_s17 = int_to_ptr.vmem [resolvable:$true] %s2170_s17 }
 0x1dd   : > { %v1141_v51 = vpop.permute.xlu0 %1140 }
 0x1de   : > { %v1143_v52 = vpop.permute.xlu1 %1142 }
 0x1df   : > { %v1144_v36 = vsel %vm1097_vm11, %v1141_v51, %v1143_v52  ;;  %v1145_v37 = vsel %vm1097_vm11, %v1143_v52, %v1141_v51 }
 0x1e0   : > { %v1146_v44 = vsel %vm2066_vm9, %v1145_v37, %v1138_v40  ;;  %v1147_v45 = vsel %vm2074_vm10, %v1144_v36, %v1139_v41 }
 0x1e1   : > { %v2034_v54 = vpop.permute.xlu0 %1179 }
 0x1e2   : > { %v2036_v55 = vpop.permute.xlu1 %1181 }
 0x231   : > { %v1049_v58 = vpop.permute.xlu0 %1048  ;;  %v1051_v59 = vpop.permute.xlu1 %1050 }
 0x232   : > { %v1053_v0 = vsel %vm1052_vm4, %v1049_v58, %v1051_v59  ;;  %v1054_v2 = vsel %vm1052_vm4, %v1051_v59, %v1049_v58  ;;  %v1183_v58 = vsel %vm1154_vm3, %v2034_v54, %v2036_v55  ;;  %v1184_v59 = vsel %vm1154_vm3, %v2036_v55, %v2034_v54 }
 0x235   : > { %v1056_v62 = vpop.permute.xlu0 %1055  ;;  %v1058_v63 = vpop.permute.xlu1 %1057 }
 0x236   : > { %v1060_v4 = vsel %vm1059_vm7, %v1056_v62, %v1058_v63  ;;  %v1061_v5 = vsel %vm1059_vm7, %v1058_v63, %v1056_v62 }
 0x237   : > { %v1062_v9 = vsel %vm2040_vm5, %v1060_v4, %v1054_v2  ;;  %v1063_v10 = vsel %vm2044_vm6, %v1061_v5, %v1053_v0 }
 0x238   : > { %v1078_v11 = vadd.f32 %v1077_v8, %v1062_v9  ;;  %v1079_v12 = vadd.f32 %v1076_v7, %v1063_v10 }
 0x239   : > { %v1087_v13 = vpop.permute.xlu0 %1086  ;;  %v1089_v14 = vpop.permute.xlu1 %1088 }
 0x23a   : > { %v1091_v21 = vsel %vm1090_vm8, %v1087_v13, %v1089_v14  ;;  %v1092_v22 = vsel %vm1090_vm8, %v1089_v14, %v1087_v13 }
 0x23d   : > { %v1094_v19 = vpop.permute.xlu0 %1093  ;;  %v1096_v20 = vpop.permute.xlu1 %1095 }
 0x23e   : > { %v1098_v23 = vsel %vm1097_vm11, %v1094_v19, %v1096_v20  ;;  %v1099_v24 = vsel %vm1097_vm11, %v1096_v20, %v1094_v19 }
 0x23f   : > { %v1100_v25 = vsel %vm2066_vm9, %v1099_v24, %v1091_v21  ;;  %v1101_v27 = vsel %vm2074_vm10, %v1098_v23, %v1092_v22 }
 0x240   : > { %v1102_v30 = vadd.f32 %v1100_v25, %v1078_v11  ;;  %v1103_v31 = vadd.f32 %v1101_v27, %v1079_v12  ;;  %v339_v11 = vld [vmem:[%s328_s16] sm:$0xff]  ;;  %v356_v12 = vld [vmem:[%s275_s19] sm:$0xff]  ;;  %s323_s19 = scalar_lea.vmem [#allocation6], %s1832_s28 }
 0x241   : > { %v1158_v34 = vpop.permute.xlu0 %1157  ;;  %v1160_v35 = vpop.permute.xlu1 %1159  ;;  %v1211_v13 = vmul.f32 %v1850_v1, %v339_v11  ;;  %v1217_v14 = vmul.f32 %v356_v12, %v340_v26  ;;  %s1268_s8 = sshll.u32 %s323_s19, 4  ;;  %s2165_s8 = int_to_ptr.vmem [resolvable:$true] %s1268_s8 }
 0x242   : > { %v1124_v38 = vadd.f32 %v1122_v32, %v1102_v30  ;;  %v1125_v39 = vadd.f32 %v1123_v33, %v1103_v31  ;;  %v1161_v46 = vsel %vm1052_vm4, %v1158_v34, %v1160_v35  ;;  %v1162_v47 = vsel %vm1052_vm4, %v1160_v35, %v1158_v34  ;;  %s1579_s16 = scalar_lea.vmem %s2165_s8, 128  ;;  %p1586_p10 = scmp.lt.s32.totalorder %s2165_s8, %s1584_s7 }
 0x243   : > { %v1213_v15 = vcombine.high %v1211_v13, %v1211_v13  ;;  %v1219_v17 = vcombine.high %v1217_v14, %v1217_v14  ;;  %p1580_p6 = scmp.ne.s32.totalorder %s2165_s8, %s1579_s16  ;;  %p1587_p2 = scmp.lt.s32.totalorder %s1585_s12, %s1579_s16 }
 0x244   : > { %v1126_v42 = vadd.f32 %v1974_v3, %v1124_v38  ;;  %v1127_v43 = vadd.f32 %v1976_v6, %v1125_v39 }
 0x245   : > { %v1164_v48 = vpop.permute.xlu0 %1163  ;;  %v1166_v51 = vpop.permute.xlu1 %1165  ;;  %p1581_p13 = pnand %p1580_p6, %p2271_p12  ;;  %p1588_p4 = por %p1587_p2, %p1586_p10 }
 0x246   : > { %v1148_v52 = vadd.f32 %v1146_v44, %v1126_v42  ;;  %v1149_v49 = vadd.f32 %v1147_v45, %v1127_v43  ;;  %v1167_v3 = vsel %vm1059_vm7, %v1164_v48, %v1166_v51  ;;  %v1168_v6 = vsel %vm1059_vm7, %v1166_v51, %v1164_v48 }
 0x247   : > { %v1169_v50 = vsel %vm2040_vm5, %v1167_v3, %v1162_v47  ;;  %v1170_v53 = vsel %vm2044_vm6, %v1168_v6, %v1161_v46  ;;  %p1582_p7 = pneg %p1581_p13 }
 0x248   : > { %v1171_v56 = vadd.f32 %v1169_v50, %v1148_v52  ;;  %v1172_v57 = vadd.f32 %v1170_v53, %v1149_v49 }
 0x249   : > { %v1194_v62 = vpop.permute.xlu0 %1193  ;;  %v1196_v60 = vpop.permute.xlu1 %1195  ;;  %p1589_p5 = pnand %p1588_p4, %p1582_p7 }
 0x24a   : > { %v1185_v63 = vadd.f32 %v1183_v58, %v1171_v56  ;;  %v1186_v0 = vadd.f32 %v1184_v59, %v1172_v57  ;;  %v1197_v4 = vsel %vm1090_vm8, %v1194_v62, %v1196_v60  ;;  %v1198_v5 = vsel %vm1090_vm8, %v1196_v60, %v1194_v62 }
 0x24d   : > { %v1200_v61 = vpop.permute.xlu0 %1199  ;;  %v1202_v2 = vpop.permute.xlu1 %1201 }
 0x24e   : > { %v1203_v7 = vsel %vm1097_vm11, %v1200_v61, %v1202_v2  ;;  %v1204_v54 = vsel %vm1097_vm11, %v1202_v2, %v1200_v61 }
 0x24f   : > { %v1205_v55 = vsel %vm2066_vm9, %v1204_v54, %v1197_v4  ;;  %v1206_v8 = vsel %vm2074_vm10, %v1203_v7, %v1198_v5 }
 0x250   : > { %v1207_v9 = vadd.f32 %v1205_v55, %v1185_v63  ;;  %v1208_v10 = vadd.f32 %v1206_v8, %v1186_v0 }
 0x252   : > { %1545 = vtanh.f32 %v1207_v9 }
 0x253   : > { %1547 = vtanh.f32 %v1208_v10 }
 0x25c   : > { %v1546_v16 = vpop.eup %1545 }
 0x25d   : > { %v1548_v18 = vpop.eup %1547  ;;  %v1215_v19 = vsub.f32 %v1546_v16, %v1211_v13 }
 0x25e   : > { %v1216_v20 = vsub.f32 %v1548_v18, %v1213_v15 }
 0x25f   : > { %v1221_v21 = vsub.f32 %v1215_v19, %v1217_v14 }
 0x260   : > { %v1222_v22 = vsub.f32 %v1216_v20, %v1219_v17 }
 0x261   : > { %v1223_v23 = vmul.f32 0.05, %v1221_v21 }
 0x262   : > { %v1224_v24 = vmul.f32 0.05, %v1222_v22 }
 0x264   : > { %v1227_v25 = vcombine.low %v1223_v23, %v1224_v24 }
 0x266   : > { %v1229_v27 = vadd.f32 %v1227_v25, %v356_v12 }
 0x268   : > { %v1230_v28 = vmul.f32 0.05, %v1229_v27  ;;  %1233 = vst [vmem:[%s323_s19] sm:$0xff] %v1229_v27 }
 0x269   : > { %1592 = shalt.err (!%p1589_p5)
}
 0x26a   : > { %s1593_s19 = scalar_lea.hbm %s2163_s14, 128  ;;  %s1597_s20 = scalar_lea.hbm %s2253_s6, 256 }
 0x26b   : > { %p1594_p8 = scmp.ne.s32.totalorder %s2163_s14, %s1593_s19  ;;  %p1598_p1 = scmp.lt.u32.totalorder %s2163_s14, %s2253_s6 }
 0x26c   : > { %p1599_p3 = scmp.lt.u32.totalorder %s1597_s20, %s1593_s19  ;;  %p1601_p6 = scmp.lt.u32.totalorder %s1593_s19, %s2163_s14 }
 0x26d   : > { %p1595_p9 = pnand %p1594_p8, %p2271_p12 }
 0x26e   : > { %p1600_p11 = por %p1599_p3, %p1598_p1 }
 0x26f   : > { %p1596_p0 = pneg %p1595_p9 }
 0x270   : > { %p1602_p13 = por %p1601_p6, %p1600_p11 }
 0x272   : > { %p1603_p7 = pnand %p1602_p13, %p1596_p0 }
 0x274   : > { %1606 = shalt.err (!%p1603_p7)
}
 0x275   : > { %1489 = dma.vmem_to_hbm [thread:$0]  (%p2271_p12), %s2165_s8, 128, %s2163_s14, %s1240_s29   ;;  %v1231_v29 = vadd.f32 %v1230_v28, %v1850_v1 }
 0x276   : > { %s2200_s12 = scalar_lea.hbm %s2252_s5, %s1434_s18  ;;  %s2272_s19 = scalar_lea.vmem [#allocation5], %s1832_s28 }
 0x277   : > { %1232 = vst [vmem:[%s2272_s19] sm:$0xff] %v1231_v29  ;;  %s1235_s13 = scalar_lea.sflag [#allocation4], %s1829_s26  ;;  %s1607_s11 = scalar_lea.vmem %s2203_s17, 128 }
 0x278   : > { %p1608_p10 = scmp.ne.s32.totalorder %s2203_s17, %s1607_s11  ;;  %s1688_s8 = smov [#allocation5]  }
 0x279   : > { %s1611_s25 = sshll.u32 %s1688_s8, 4  ;;  %s1612_s25 = int_to_ptr.vmem [resolvable:$false] %s1611_s25 }
 0x27a   : > { %p1609_p2 = pnand %p1608_p10, %p2271_p12  ;;  %s1613_s14 = scalar_lea.vmem %s1612_s25, 256 }
 0x27b   : > { %p1614_p5 = scmp.lt.s32.totalorder %s2203_s17, %s1612_s25  ;;  %p1615_p8 = scmp.lt.s32.totalorder %s1613_s14, %s1607_s11 }
 0x27c   : > { %p1610_p4 = pneg %p1609_p2 }
 0x27d   : > { %p1616_p9 = por %p1615_p8, %p1614_p5 }
 0x27f   : > { %p1617_p0 = pnand %p1616_p9, %p1610_p4 }
 0x281   : > { %1620 = shalt.err (!%p1617_p0)
}
 0x282   : > { %s1621_s26 = scalar_lea.hbm %s2200_s12, 128  ;;  %s1625_s29 = scalar_lea.hbm %s2252_s5, 256 }
 0x283   : > { %p1622_p1 = scmp.ne.s32.totalorder %s2200_s12, %s1621_s26  ;;  %p1626_p6 = scmp.lt.u32.totalorder %s2200_s12, %s2252_s5 }
 0x284   : > { %p1627_p13 = scmp.lt.u32.totalorder %s1625_s29, %s1621_s26  ;;  %p1629_p10 = scmp.lt.u32.totalorder %s1621_s26, %s2200_s12 }
 0x285   : > { %p1623_p3 = pnand %p1622_p1, %p2271_p12 }
 0x286   : > { %p1628_p7 = por %p1627_p13, %p1626_p6 }
 0x287   : > { %p1624_p11 = pneg %p1623_p3 }
 0x288   : > { %p1630_p2 = por %p1629_p10, %p1628_p7 }
 0x28a   : > { %p1631_p4 = pnand %p1630_p2, %p1624_p11 }
 0x28c   : > { %1634 = shalt.err (!%p1631_p4)
}
 0x28d   : > { %1488 = dma.vmem_to_hbm [thread:$0]  (%p2271_p12), %s2203_s17, 128, %s2200_s12, %s1235_s13  }
 0x28e PF: > { %s1280_s15 = sand.u32 1, %s1665_s21   ;;  %p2273_p5 = scmp.ne.s32.totalorder %s2259_s10, 0 }
 0x28f   : > { %p2274_p8 = scmp.ge.s32.totalorder %s1677_s24, 2  ;;  %s1281_s16 = scalar_lea.sflag [#allocation4], %s1280_s15 }
 0x291   : > { %p1497_p9 = pnand %p2274_p8, %p2273_p5 }
 0x293   : > { %1656 = dma.done.wait (!%p1497_p9), %s1281_s16, 128  }
 0x294   : > { %1658 = vsyncadd (!%p1497_p9), %s1281_s16, 4294967168  ;;  %s1290_s19 = scalar_lea.sflag [#allocation7], %s1280_s15 }
 0x295   : > { %1660 = dma.done.wait (!%p1497_p9), %s1290_s19, 128  }
 0x296   : > { %1662 = vsyncadd (!%p1497_p9), %s1290_s19, 4294967168  ;;  %p23_p12 = scmp.ge.s32.totalorder %s1749_s27, 4   ;;  %s2275_s21 = smov %s1669_s22 }
 0x297   : > { %s2276_s22 = smov %s1673_s23  ;;  %s2277_s23 = smov %s1761_s30 }
 0x298   : > { %s2278_s24 = smov %s1749_s27  ;;  %25 = sbr.rel (!%p23_p12) target bundleno = 7 (0x7), region = 111 }
 0x29f   :  { %1295 = vsyncpa [#allocation3], 1 }
 0x2a0   :  { %1297 = vsyncpa [#allocation3 + $0x1], 1 }
 0x2a1   :  { %1298 = vsyncpa [#allocation4], 1 }
 0x2a2   :  { %1300 = vsyncpa [#allocation4 + $0x1], 1 }
 0x2a3   :  { %1301 = vsyncpa [#allocation7], 1 }
 0x2a4   :  { %1303 = vsyncpa [#allocation7 + $0x1], 1 }

</bundles_post_ra>
